<compile_context>
chip_gen: v7x
topology: tpu7x:2x2x1
jax: 0.10.0
libtpu: 0.0.40
codegen_flags: <defaults>
</compile_context>

<pallas_src>
import functools

import jax
import jax.numpy as jnp
from jax.experimental import pallas as pl
from jax.experimental.pallas import tpu as pltpu

_L = 128  # lane width: fused-weight row count, output lane padding


def _sigmoid(z):
    # Exactly sigmoid(z); tanh lowers to a single EUP op on the serial chain.
    return 0.5 * jnp.tanh(0.5 * z) + 0.5


def one_to_many_rnn_kernel(x_ref, slab_ref, ys_ref, *, hidden_size, output_times):
    """Whole recurrence in one invocation; state lives in vregs, T is unrolled.

    Slab layout (built once in pack_params):
      rows 0..127  : W_big.  rows i<H, cols j<H = W_aa^T; rows i<H, col H = W_ya^T;
                     all other entries zero (so junk lanes of the activation vreg
                     and the padded contraction rows contribute nothing).
      row 128      : fused bias  [b_aa+b_ax (lanes 0..H-1), b_ya (lane H), 0 ...]
      row 129      : W_ax^T      [W_ax (lanes 0..H-1), 0 ...]
    """
    H, T = hidden_size, output_times
    Bp, Lp = ys_ref.shape

    w_big = slab_ref[0:_L, :]                 # (128, 128), loaded once, reused T times
    bias_vec = slab_ref[_L:_L + 1, :]         # (1, 128)
    wax_vec = slab_ref[_L + 1:_L + 2, :]      # (1, 128)

    x = x_ref[...]                            # (Bp, 1)
    lane = jax.lax.broadcasted_iota(jnp.int32, (Bp, Lp), 1)

    # Peeled t == 0: hidden state starts at zeros, so a@W_aa^T == 0 -> no matmul.
    # lanes 0..H-1 = x*W_ax^T + (b_aa+b_ax) = pre_0 ; other lanes finite junk that
    # only ever multiplies zero rows of w_big.
    full_pre = x * wax_vec + bias_vec         # (Bp, 128)
    acc = jnp.zeros((Bp, Lp), jnp.float32)

    for t in range(T):                        # small fixed trip count -> static unroll
        a_full = _sigmoid(full_pre)           # one EUP op on the whole vreg
        # Fused matmul: lanes 0..H-1 = a@W_aa^T + b_a ; lane H = a@W_ya^T + b_ya.
        zb = jnp.dot(a_full, w_big, preferred_element_type=jnp.float32) + bias_vec
        y = _sigmoid(zb[:, H:H + 1])          # (Bp, 1): y_t (ya projection + bias)
        acc = jnp.where(lane == t, y, acc)    # place y_t at lane t (VPU slack)
        if t + 1 < T:                         # feed y back only if another step follows
            full_pre = zb + y * wax_vec       # lanes 0..H-1 become pre_{t+1}

    ys_ref[...] = acc                         # one unmasked lane-dense store


def pack_params(params):
    """Build the single (136, 128) f32 parameter slab.  Call ONCE per parameter set."""
    H = params["W_aa"].shape[0]
    # TODO(synk): if hidden_size ever exceeds 127, widen w_big / the slab to the next
    # multiple of 128 lanes and move the y-logit column accordingly.
    assert H + 1 <= _L, "hidden_size must be <= 127 for the fused y-logit column"

    w_big = jnp.zeros((_L, _L), jnp.float32)
    w_big = w_big.at[:H, :H].set(params["W_aa"].T.astype(jnp.float32))
    w_big = w_big.at[:H, H].set(params["W_ya"].reshape(H).astype(jnp.float32))

    bias_vec = jnp.zeros((_L,), jnp.float32)
    bias_vec = bias_vec.at[:H].set((params["b_aa"] + params["b_ax"]).astype(jnp.float32))
    bias_vec = bias_vec.at[H].set(params["b_ya"].reshape(()).astype(jnp.float32))

    wax_vec = jnp.zeros((_L,), jnp.float32)
    wax_vec = wax_vec.at[:H].set(params["W_ax"].reshape(H).astype(jnp.float32))

    pad = jnp.zeros((6, _L), jnp.float32)     # pad rows 130..135 -> sublane multiple of 8
    return jnp.concatenate([w_big, bias_vec[None], wax_vec[None], pad], axis=0)


@functools.partial(jax.jit, static_argnames=("hidden_size", "output_times"))
def one_to_many_rnn(x, slab, *, hidden_size, output_times):
    """x: (B, 1, 1) float32, slab from pack_params.  Returns (B, output_times, 1)."""
    B = x.shape[0]
    T = int(output_times)
    Bp = max(8, -(-B // 8) * 8)                       # pad batch to the sublane tile
    Lp = max(_L, -(-T // _L) * _L)                    # lane-dense output width
    # TODO(synk): for very large output_times switch the static unroll to a
    # lightly-unrolled lax.fori_loop carrying (full_pre, acc).

    x2 = jnp.zeros((Bp, 1), jnp.float32).at[:B, :].set(
        x.reshape(B, 1).astype(jnp.float32))

    vmem = pl.BlockSpec(memory_space=pltpu.MemorySpace.VMEM)
    kernel = functools.partial(one_to_many_rnn_kernel,
                               hidden_size=hidden_size, output_times=T)

    ys = pl.pallas_call(
        kernel,
        out_shape=jax.ShapeDtypeStruct((Bp, Lp), jnp.float32),
        in_specs=[vmem, vmem],
        out_specs=vmem,
    )(x2, slab)

    # PyTorch: result = cat((y_0,...,y_{T-1}), 0) -> (T*B, 1, 1); reshape (B, T, 1).
    # ys[:B, :T].T is exactly the (T, B) concatenation; row-major reshape matches.
    return ys[:B, :T].T.reshape(B, T, 1)


def _reference(x, params, output_times):
    """Pure-JAX reference mirroring the PyTorch forward."""
    B = x.shape[0]
    H = params["W_aa"].shape[0]
    a = jnp.zeros((B, H), jnp.float32)
    inp = x.reshape(B, 1)
    ys = []
    for _ in range(output_times):
        a = jax.nn.sigmoid(a @ params["W_aa"].T + params["b_aa"]
                           + inp @ params["W_ax"].T + params["b_ax"])
        inp = jax.nn.sigmoid(a @ params["W_ya"].T + params["b_ya"])
        ys.append(inp)
    result = jnp.stack(ys, axis=0)            # (T, B, 1) == cat along dim 0
    return result.reshape(B, output_times, 1)


if __name__ == "__main__":
    # Module hyper-params: input_size == output_size == 1 (required by the reshape),
    # hidden_size = 32, output_times = 8, bias=False, sigmoid activations.
    B, H, T = 2, 32, 8
    key = jax.random.PRNGKey(0)
    kx, k1, k2, k3, k4, k5, k6 = jax.random.split(key, 7)

    def uinit(k, shape, fan_in):
        bound = 1.0 / jnp.sqrt(fan_in)
        return jax.random.uniform(k, shape, jnp.float32, -bound, bound)

    params = {
        "W_aa": uinit(k1, (H, H), H),   # nn.Linear(hidden, hidden)
        "b_aa": uinit(k2, (H,), H),
        "W_ax": uinit(k3, (H, 1), 1),   # nn.Linear(input=1, hidden)
        "b_ax": uinit(k4, (H,), 1),
        "W_ya": uinit(k5, (1, H), H),   # nn.Linear(hidden, output=1)
        "b_ya": uinit(k6, (1,), H),
    }

    x = jax.random.normal(kx, (B, 1, 1), jnp.float32)

    slab = jax.block_until_ready(pack_params(params))     # once per parameter set

    out = one_to_many_rnn(x, slab, hidden_size=H, output_times=T)
    out = jax.block_until_ready(out)

    ref = _reference(x, params, T)
    assert out.shape == (B, T, 1), out.shape
    assert jnp.allclose(out, ref, rtol=1e-5, atol=1e-5), "mismatch vs reference"

    print("KERNEL_OK")
</pallas_src>

<mosaic_0001>
module attributes {stable_mosaic.version = 11 : i64} {
  func.func @one_to_many_rnn_kernel(%arg0: memref<8x1xf32, #tpu.memory_space<vmem>>, %arg1: memref<136x128xf32, #tpu.memory_space<vmem>>, %arg2: memref<8x128xf32, #tpu.memory_space<vmem>>) attributes {dimension_semantics = [], scalar_prefetch = 0 : i64, scratch_operands = 0 : i64, tpu.core_type = #tpu.core_type<tc>} {
    %c0 = arith.constant 0 : index
    %c0_0 = arith.constant 0 : index
    %0 = vector.load %arg1[%c0, %c0_0] : memref<136x128xf32, #tpu.memory_space<vmem>>, vector<128x128xf32>
    %c128 = arith.constant 128 : index
    %c0_1 = arith.constant 0 : index
    %1 = vector.load %arg1[%c128, %c0_1] : memref<136x128xf32, #tpu.memory_space<vmem>>, vector<1x128xf32>
    %c129 = arith.constant 129 : index
    %c0_2 = arith.constant 0 : index
    %2 = vector.load %arg1[%c129, %c0_2] : memref<136x128xf32, #tpu.memory_space<vmem>>, vector<1x128xf32>
    %c0_3 = arith.constant 0 : index
    %c0_4 = arith.constant 0 : index
    %3 = vector.load %arg0[%c0_3, %c0_4] : memref<8x1xf32, #tpu.memory_space<vmem>>, vector<8x1xf32>
    %4 = tpu.iota {dimensions = array<i32: 1>} : vector<8x128xi32>
    %5 = vector.broadcast %3 : vector<8x1xf32> to vector<8x128xf32>
    %6 = vector.broadcast %2 : vector<1x128xf32> to vector<8x128xf32>
    %7 = arith.mulf %5, %6 : vector<8x128xf32>
    %8 = vector.broadcast %1 : vector<1x128xf32> to vector<8x128xf32>
    %9 = arith.addf %7, %8 : vector<8x128xf32>
    %cst = arith.constant 0.000000e+00 : f32
    %10 = vector.broadcast %cst : f32 to vector<8x128xf32>
    %cst_5 = arith.constant 5.000000e-01 : f32
    %11 = vector.broadcast %cst_5 : f32 to vector<8x128xf32>
    %12 = arith.mulf %11, %9 : vector<8x128xf32>
    %13 = math.tanh %12 : vector<8x128xf32>
    %cst_6 = arith.constant 5.000000e-01 : f32
    %14 = vector.broadcast %cst_6 : f32 to vector<8x128xf32>
    %15 = arith.mulf %14, %13 : vector<8x128xf32>
    %cst_7 = arith.constant 5.000000e-01 : f32
    %16 = vector.broadcast %cst_7 : f32 to vector<8x128xf32>
    %17 = arith.addf %15, %16 : vector<8x128xf32>
    %cst_8 = arith.constant dense<0.000000e+00> : vector<8x128xf32>
    %18 = tpu.matmul %17, %0, %cst_8 {dimension_numbers = #tpu.dot_dimension_numbers<[1], [0], [0], [1], [0, 0, 1, 1], [], []>} : vector<8x128xf32>, vector<128x128xf32>, vector<8x128xf32> -> vector<8x128xf32>
    %19 = vector.broadcast %1 : vector<1x128xf32> to vector<8x128xf32>
    %20 = arith.addf %18, %19 : vector<8x128xf32>
    %21 = vector.extract_strided_slice %20 {offsets = [0, 32], sizes = [8, 1], strides = [1, 1]} : vector<8x128xf32> to vector<8x1xf32>
    %cst_9 = arith.constant 5.000000e-01 : f32
    %22 = vector.broadcast %cst_9 : f32 to vector<8x1xf32>
    %23 = arith.mulf %22, %21 : vector<8x1xf32>
    %24 = math.tanh %23 : vector<8x1xf32>
    %cst_10 = arith.constant 5.000000e-01 : f32
    %25 = vector.broadcast %cst_10 : f32 to vector<8x1xf32>
    %26 = arith.mulf %25, %24 : vector<8x1xf32>
    %cst_11 = arith.constant 5.000000e-01 : f32
    %27 = vector.broadcast %cst_11 : f32 to vector<8x1xf32>
    %28 = arith.addf %26, %27 : vector<8x1xf32>
    %c0_i32 = arith.constant 0 : i32
    %29 = vector.broadcast %c0_i32 : i32 to vector<8x128xi32>
    %30 = arith.cmpi eq, %4, %29 : vector<8x128xi32>
    %31 = vector.shape_cast %28 : vector<8x1xf32> to vector<8x1xf32>
    %32 = vector.broadcast %31 : vector<8x1xf32> to vector<8x128xf32>
    %33 = arith.select %30, %32, %10 : vector<8x128xi1>, vector<8x128xf32>
    %34 = vector.broadcast %28 : vector<8x1xf32> to vector<8x128xf32>
    %35 = vector.broadcast %2 : vector<1x128xf32> to vector<8x128xf32>
    %36 = arith.mulf %34, %35 : vector<8x128xf32>
    %37 = arith.addf %20, %36 : vector<8x128xf32>
    %cst_12 = arith.constant 5.000000e-01 : f32
    %38 = vector.broadcast %cst_12 : f32 to vector<8x128xf32>
    %39 = arith.mulf %38, %37 : vector<8x128xf32>
    %40 = math.tanh %39 : vector<8x128xf32>
    %cst_13 = arith.constant 5.000000e-01 : f32
    %41 = vector.broadcast %cst_13 : f32 to vector<8x128xf32>
    %42 = arith.mulf %41, %40 : vector<8x128xf32>
    %cst_14 = arith.constant 5.000000e-01 : f32
    %43 = vector.broadcast %cst_14 : f32 to vector<8x128xf32>
    %44 = arith.addf %42, %43 : vector<8x128xf32>
    %cst_15 = arith.constant dense<0.000000e+00> : vector<8x128xf32>
    %45 = tpu.matmul %44, %0, %cst_15 {dimension_numbers = #tpu.dot_dimension_numbers<[1], [0], [0], [1], [0, 0, 1, 1], [], []>} : vector<8x128xf32>, vector<128x128xf32>, vector<8x128xf32> -> vector<8x128xf32>
    %46 = vector.broadcast %1 : vector<1x128xf32> to vector<8x128xf32>
    %47 = arith.addf %45, %46 : vector<8x128xf32>
    %48 = vector.extract_strided_slice %47 {offsets = [0, 32], sizes = [8, 1], strides = [1, 1]} : vector<8x128xf32> to vector<8x1xf32>
    %cst_16 = arith.constant 5.000000e-01 : f32
    %49 = vector.broadcast %cst_16 : f32 to vector<8x1xf32>
    %50 = arith.mulf %49, %48 : vector<8x1xf32>
    %51 = math.tanh %50 : vector<8x1xf32>
    %cst_17 = arith.constant 5.000000e-01 : f32
    %52 = vector.broadcast %cst_17 : f32 to vector<8x1xf32>
    %53 = arith.mulf %52, %51 : vector<8x1xf32>
    %cst_18 = arith.constant 5.000000e-01 : f32
    %54 = vector.broadcast %cst_18 : f32 to vector<8x1xf32>
    %55 = arith.addf %53, %54 : vector<8x1xf32>
    %c1_i32 = arith.constant 1 : i32
    %56 = vector.broadcast %c1_i32 : i32 to vector<8x128xi32>
    %57 = arith.cmpi eq, %4, %56 : vector<8x128xi32>
    %58 = vector.shape_cast %55 : vector<8x1xf32> to vector<8x1xf32>
    %59 = vector.broadcast %58 : vector<8x1xf32> to vector<8x128xf32>
    %60 = arith.select %57, %59, %33 : vector<8x128xi1>, vector<8x128xf32>
    %61 = vector.broadcast %55 : vector<8x1xf32> to vector<8x128xf32>
    %62 = vector.broadcast %2 : vector<1x128xf32> to vector<8x128xf32>
    %63 = arith.mulf %61, %62 : vector<8x128xf32>
    %64 = arith.addf %47, %63 : vector<8x128xf32>
    %cst_19 = arith.constant 5.000000e-01 : f32
    %65 = vector.broadcast %cst_19 : f32 to vector<8x128xf32>
    %66 = arith.mulf %65, %64 : vector<8x128xf32>
    %67 = math.tanh %66 : vector<8x128xf32>
    %cst_20 = arith.constant 5.000000e-01 : f32
    %68 = vector.broadcast %cst_20 : f32 to vector<8x128xf32>
    %69 = arith.mulf %68, %67 : vector<8x128xf32>
    %cst_21 = arith.constant 5.000000e-01 : f32
    %70 = vector.broadcast %cst_21 : f32 to vector<8x128xf32>
    %71 = arith.addf %69, %70 : vector<8x128xf32>
    %cst_22 = arith.constant dense<0.000000e+00> : vector<8x128xf32>
    %72 = tpu.matmul %71, %0, %cst_22 {dimension_numbers = #tpu.dot_dimension_numbers<[1], [0], [0], [1], [0, 0, 1, 1], [], []>} : vector<8x128xf32>, vector<128x128xf32>, vector<8x128xf32> -> vector<8x128xf32>
    %73 = vector.broadcast %1 : vector<1x128xf32> to vector<8x128xf32>
    %74 = arith.addf %72, %73 : vector<8x128xf32>
    %75 = vector.extract_strided_slice %74 {offsets = [0, 32], sizes = [8, 1], strides = [1, 1]} : vector<8x128xf32> to vector<8x1xf32>
    %cst_23 = arith.constant 5.000000e-01 : f32
    %76 = vector.broadcast %cst_23 : f32 to vector<8x1xf32>
    %77 = arith.mulf %76, %75 : vector<8x1xf32>
    %78 = math.tanh %77 : vector<8x1xf32>
    %cst_24 = arith.constant 5.000000e-01 : f32
    %79 = vector.broadcast %cst_24 : f32 to vector<8x1xf32>
    %80 = arith.mulf %79, %78 : vector<8x1xf32>
    %cst_25 = arith.constant 5.000000e-01 : f32
    %81 = vector.broadcast %cst_25 : f32 to vector<8x1xf32>
    %82 = arith.addf %80, %81 : vector<8x1xf32>
    %c2_i32 = arith.constant 2 : i32
    %83 = vector.broadcast %c2_i32 : i32 to vector<8x128xi32>
    %84 = arith.cmpi eq, %4, %83 : vector<8x128xi32>
    %85 = vector.shape_cast %82 : vector<8x1xf32> to vector<8x1xf32>
    %86 = vector.broadcast %85 : vector<8x1xf32> to vector<8x128xf32>
    %87 = arith.select %84, %86, %60 : vector<8x128xi1>, vector<8x128xf32>
    %88 = vector.broadcast %82 : vector<8x1xf32> to vector<8x128xf32>
    %89 = vector.broadcast %2 : vector<1x128xf32> to vector<8x128xf32>
    %90 = arith.mulf %88, %89 : vector<8x128xf32>
    %91 = arith.addf %74, %90 : vector<8x128xf32>
    %cst_26 = arith.constant 5.000000e-01 : f32
    %92 = vector.broadcast %cst_26 : f32 to vector<8x128xf32>
    %93 = arith.mulf %92, %91 : vector<8x128xf32>
    %94 = math.tanh %93 : vector<8x128xf32>
    %cst_27 = arith.constant 5.000000e-01 : f32
    %95 = vector.broadcast %cst_27 : f32 to vector<8x128xf32>
    %96 = arith.mulf %95, %94 : vector<8x128xf32>
    %cst_28 = arith.constant 5.000000e-01 : f32
    %97 = vector.broadcast %cst_28 : f32 to vector<8x128xf32>
    %98 = arith.addf %96, %97 : vector<8x128xf32>
    %cst_29 = arith.constant dense<0.000000e+00> : vector<8x128xf32>
    %99 = tpu.matmul %98, %0, %cst_29 {dimension_numbers = #tpu.dot_dimension_numbers<[1], [0], [0], [1], [0, 0, 1, 1], [], []>} : vector<8x128xf32>, vector<128x128xf32>, vector<8x128xf32> -> vector<8x128xf32>
    %100 = vector.broadcast %1 : vector<1x128xf32> to vector<8x128xf32>
    %101 = arith.addf %99, %100 : vector<8x128xf32>
    %102 = vector.extract_strided_slice %101 {offsets = [0, 32], sizes = [8, 1], strides = [1, 1]} : vector<8x128xf32> to vector<8x1xf32>
    %cst_30 = arith.constant 5.000000e-01 : f32
    %103 = vector.broadcast %cst_30 : f32 to vector<8x1xf32>
    %104 = arith.mulf %103, %102 : vector<8x1xf32>
    %105 = math.tanh %104 : vector<8x1xf32>
    %cst_31 = arith.constant 5.000000e-01 : f32
    %106 = vector.broadcast %cst_31 : f32 to vector<8x1xf32>
    %107 = arith.mulf %106, %105 : vector<8x1xf32>
    %cst_32 = arith.constant 5.000000e-01 : f32
    %108 = vector.broadcast %cst_32 : f32 to vector<8x1xf32>
    %109 = arith.addf %107, %108 : vector<8x1xf32>
    %c3_i32 = arith.constant 3 : i32
    %110 = vector.broadcast %c3_i32 : i32 to vector<8x128xi32>
    %111 = arith.cmpi eq, %4, %110 : vector<8x128xi32>
    %112 = vector.shape_cast %109 : vector<8x1xf32> to vector<8x1xf32>
    %113 = vector.broadcast %112 : vector<8x1xf32> to vector<8x128xf32>
    %114 = arith.select %111, %113, %87 : vector<8x128xi1>, vector<8x128xf32>
    %115 = vector.broadcast %109 : vector<8x1xf32> to vector<8x128xf32>
    %116 = vector.broadcast %2 : vector<1x128xf32> to vector<8x128xf32>
    %117 = arith.mulf %115, %116 : vector<8x128xf32>
    %118 = arith.addf %101, %117 : vector<8x128xf32>
    %cst_33 = arith.constant 5.000000e-01 : f32
    %119 = vector.broadcast %cst_33 : f32 to vector<8x128xf32>
    %120 = arith.mulf %119, %118 : vector<8x128xf32>
    %121 = math.tanh %120 : vector<8x128xf32>
    %cst_34 = arith.constant 5.000000e-01 : f32
    %122 = vector.broadcast %cst_34 : f32 to vector<8x128xf32>
    %123 = arith.mulf %122, %121 : vector<8x128xf32>
    %cst_35 = arith.constant 5.000000e-01 : f32
    %124 = vector.broadcast %cst_35 : f32 to vector<8x128xf32>
    %125 = arith.addf %123, %124 : vector<8x128xf32>
    %cst_36 = arith.constant dense<0.000000e+00> : vector<8x128xf32>
    %126 = tpu.matmul %125, %0, %cst_36 {dimension_numbers = #tpu.dot_dimension_numbers<[1], [0], [0], [1], [0, 0, 1, 1], [], []>} : vector<8x128xf32>, vector<128x128xf32>, vector<8x128xf32> -> vector<8x128xf32>
    %127 = vector.broadcast %1 : vector<1x128xf32> to vector<8x128xf32>
    %128 = arith.addf %126, %127 : vector<8x128xf32>
    %129 = vector.extract_strided_slice %128 {offsets = [0, 32], sizes = [8, 1], strides = [1, 1]} : vector<8x128xf32> to vector<8x1xf32>
    %cst_37 = arith.constant 5.000000e-01 : f32
    %130 = vector.broadcast %cst_37 : f32 to vector<8x1xf32>
    %131 = arith.mulf %130, %129 : vector<8x1xf32>
    %132 = math.tanh %131 : vector<8x1xf32>
    %cst_38 = arith.constant 5.000000e-01 : f32
    %133 = vector.broadcast %cst_38 : f32 to vector<8x1xf32>
    %134 = arith.mulf %133, %132 : vector<8x1xf32>
    %cst_39 = arith.constant 5.000000e-01 : f32
    %135 = vector.broadcast %cst_39 : f32 to vector<8x1xf32>
    %136 = arith.addf %134, %135 : vector<8x1xf32>
    %c4_i32 = arith.constant 4 : i32
    %137 = vector.broadcast %c4_i32 : i32 to vector<8x128xi32>
    %138 = arith.cmpi eq, %4, %137 : vector<8x128xi32>
    %139 = vector.shape_cast %136 : vector<8x1xf32> to vector<8x1xf32>
    %140 = vector.broadcast %139 : vector<8x1xf32> to vector<8x128xf32>
    %141 = arith.select %138, %140, %114 : vector<8x128xi1>, vector<8x128xf32>
    %142 = vector.broadcast %136 : vector<8x1xf32> to vector<8x128xf32>
    %143 = vector.broadcast %2 : vector<1x128xf32> to vector<8x128xf32>
    %144 = arith.mulf %142, %143 : vector<8x128xf32>
    %145 = arith.addf %128, %144 : vector<8x128xf32>
    %cst_40 = arith.constant 5.000000e-01 : f32
    %146 = vector.broadcast %cst_40 : f32 to vector<8x128xf32>
    %147 = arith.mulf %146, %145 : vector<8x128xf32>
    %148 = math.tanh %147 : vector<8x128xf32>
    %cst_41 = arith.constant 5.000000e-01 : f32
    %149 = vector.broadcast %cst_41 : f32 to vector<8x128xf32>
    %150 = arith.mulf %149, %148 : vector<8x128xf32>
    %cst_42 = arith.constant 5.000000e-01 : f32
    %151 = vector.broadcast %cst_42 : f32 to vector<8x128xf32>
    %152 = arith.addf %150, %151 : vector<8x128xf32>
    %cst_43 = arith.constant dense<0.000000e+00> : vector<8x128xf32>
    %153 = tpu.matmul %152, %0, %cst_43 {dimension_numbers = #tpu.dot_dimension_numbers<[1], [0], [0], [1], [0, 0, 1, 1], [], []>} : vector<8x128xf32>, vector<128x128xf32>, vector<8x128xf32> -> vector<8x128xf32>
    %154 = vector.broadcast %1 : vector<1x128xf32> to vector<8x128xf32>
    %155 = arith.addf %153, %154 : vector<8x128xf32>
    %156 = vector.extract_strided_slice %155 {offsets = [0, 32], sizes = [8, 1], strides = [1, 1]} : vector<8x128xf32> to vector<8x1xf32>
    %cst_44 = arith.constant 5.000000e-01 : f32
    %157 = vector.broadcast %cst_44 : f32 to vector<8x1xf32>
    %158 = arith.mulf %157, %156 : vector<8x1xf32>
    %159 = math.tanh %158 : vector<8x1xf32>
    %cst_45 = arith.constant 5.000000e-01 : f32
    %160 = vector.broadcast %cst_45 : f32 to vector<8x1xf32>
    %161 = arith.mulf %160, %159 : vector<8x1xf32>
    %cst_46 = arith.constant 5.000000e-01 : f32
    %162 = vector.broadcast %cst_46 : f32 to vector<8x1xf32>
    %163 = arith.addf %161, %162 : vector<8x1xf32>
    %c5_i32 = arith.constant 5 : i32
    %164 = vector.broadcast %c5_i32 : i32 to vector<8x128xi32>
    %165 = arith.cmpi eq, %4, %164 : vector<8x128xi32>
    %166 = vector.shape_cast %163 : vector<8x1xf32> to vector<8x1xf32>
    %167 = vector.broadcast %166 : vector<8x1xf32> to vector<8x128xf32>
    %168 = arith.select %165, %167, %141 : vector<8x128xi1>, vector<8x128xf32>
    %169 = vector.broadcast %163 : vector<8x1xf32> to vector<8x128xf32>
    %170 = vector.broadcast %2 : vector<1x128xf32> to vector<8x128xf32>
    %171 = arith.mulf %169, %170 : vector<8x128xf32>
    %172 = arith.addf %155, %171 : vector<8x128xf32>
    %cst_47 = arith.constant 5.000000e-01 : f32
    %173 = vector.broadcast %cst_47 : f32 to vector<8x128xf32>
    %174 = arith.mulf %173, %172 : vector<8x128xf32>
    %175 = math.tanh %174 : vector<8x128xf32>
    %cst_48 = arith.constant 5.000000e-01 : f32
    %176 = vector.broadcast %cst_48 : f32 to vector<8x128xf32>
    %177 = arith.mulf %176, %175 : vector<8x128xf32>
    %cst_49 = arith.constant 5.000000e-01 : f32
    %178 = vector.broadcast %cst_49 : f32 to vector<8x128xf32>
    %179 = arith.addf %177, %178 : vector<8x128xf32>
    %cst_50 = arith.constant dense<0.000000e+00> : vector<8x128xf32>
    %180 = tpu.matmul %179, %0, %cst_50 {dimension_numbers = #tpu.dot_dimension_numbers<[1], [0], [0], [1], [0, 0, 1, 1], [], []>} : vector<8x128xf32>, vector<128x128xf32>, vector<8x128xf32> -> vector<8x128xf32>
    %181 = vector.broadcast %1 : vector<1x128xf32> to vector<8x128xf32>
    %182 = arith.addf %180, %181 : vector<8x128xf32>
    %183 = vector.extract_strided_slice %182 {offsets = [0, 32], sizes = [8, 1], strides = [1, 1]} : vector<8x128xf32> to vector<8x1xf32>
    %cst_51 = arith.constant 5.000000e-01 : f32
    %184 = vector.broadcast %cst_51 : f32 to vector<8x1xf32>
    %185 = arith.mulf %184, %183 : vector<8x1xf32>
    %186 = math.tanh %185 : vector<8x1xf32>
    %cst_52 = arith.constant 5.000000e-01 : f32
    %187 = vector.broadcast %cst_52 : f32 to vector<8x1xf32>
    %188 = arith.mulf %187, %186 : vector<8x1xf32>
    %cst_53 = arith.constant 5.000000e-01 : f32
    %189 = vector.broadcast %cst_53 : f32 to vector<8x1xf32>
    %190 = arith.addf %188, %189 : vector<8x1xf32>
    %c6_i32 = arith.constant 6 : i32
    %191 = vector.broadcast %c6_i32 : i32 to vector<8x128xi32>
    %192 = arith.cmpi eq, %4, %191 : vector<8x128xi32>
    %193 = vector.shape_cast %190 : vector<8x1xf32> to vector<8x1xf32>
    %194 = vector.broadcast %193 : vector<8x1xf32> to vector<8x128xf32>
    %195 = arith.select %192, %194, %168 : vector<8x128xi1>, vector<8x128xf32>
    %196 = vector.broadcast %190 : vector<8x1xf32> to vector<8x128xf32>
    %197 = vector.broadcast %2 : vector<1x128xf32> to vector<8x128xf32>
    %198 = arith.mulf %196, %197 : vector<8x128xf32>
    %199 = arith.addf %182, %198 : vector<8x128xf32>
    %cst_54 = arith.constant 5.000000e-01 : f32
    %200 = vector.broadcast %cst_54 : f32 to vector<8x128xf32>
    %201 = arith.mulf %200, %199 : vector<8x128xf32>
    %202 = math.tanh %201 : vector<8x128xf32>
    %cst_55 = arith.constant 5.000000e-01 : f32
    %203 = vector.broadcast %cst_55 : f32 to vector<8x128xf32>
    %204 = arith.mulf %203, %202 : vector<8x128xf32>
    %cst_56 = arith.constant 5.000000e-01 : f32
    %205 = vector.broadcast %cst_56 : f32 to vector<8x128xf32>
    %206 = arith.addf %204, %205 : vector<8x128xf32>
    %cst_57 = arith.constant dense<0.000000e+00> : vector<8x128xf32>
    %207 = tpu.matmul %206, %0, %cst_57 {dimension_numbers = #tpu.dot_dimension_numbers<[1], [0], [0], [1], [0, 0, 1, 1], [], []>} : vector<8x128xf32>, vector<128x128xf32>, vector<8x128xf32> -> vector<8x128xf32>
    %208 = vector.broadcast %1 : vector<1x128xf32> to vector<8x128xf32>
    %209 = arith.addf %207, %208 : vector<8x128xf32>
    %210 = vector.extract_strided_slice %209 {offsets = [0, 32], sizes = [8, 1], strides = [1, 1]} : vector<8x128xf32> to vector<8x1xf32>
    %cst_58 = arith.constant 5.000000e-01 : f32
    %211 = vector.broadcast %cst_58 : f32 to vector<8x1xf32>
    %212 = arith.mulf %211, %210 : vector<8x1xf32>
    %213 = math.tanh %212 : vector<8x1xf32>
    %cst_59 = arith.constant 5.000000e-01 : f32
    %214 = vector.broadcast %cst_59 : f32 to vector<8x1xf32>
    %215 = arith.mulf %214, %213 : vector<8x1xf32>
    %cst_60 = arith.constant 5.000000e-01 : f32
    %216 = vector.broadcast %cst_60 : f32 to vector<8x1xf32>
    %217 = arith.addf %215, %216 : vector<8x1xf32>
    %c7_i32 = arith.constant 7 : i32
    %218 = vector.broadcast %c7_i32 : i32 to vector<8x128xi32>
    %219 = arith.cmpi eq, %4, %218 : vector<8x128xi32>
    %220 = vector.shape_cast %217 : vector<8x1xf32> to vector<8x1xf32>
    %221 = vector.broadcast %220 : vector<8x1xf32> to vector<8x128xf32>
    %222 = arith.select %219, %221, %195 : vector<8x128xi1>, vector<8x128xf32>
    %c0_61 = arith.constant 0 : index
    %c0_62 = arith.constant 0 : index
    %223 = vector.load %arg2[%c0_61, %c0_62] : memref<8x128xf32, #tpu.memory_space<vmem>>, vector<8x128xf32>
    tpu.vector_store %arg2[%c0_61, %c0_62], %222 {strides = array<i32>} : memref<8x128xf32, #tpu.memory_space<vmem>>, vector<8x128xf32>,
    return
  }
}

</mosaic_0001>

<bundles_post_ra>
// kernel: one_to_many_rnn.1
= control target key start
LH: loop header
LB: loop body
LE: loop exit
PB: predicated region body
PF: predicated region fallthrough
CT: control target
= control target key end

     0   :  { %7 = vsyncpa [#allocation3], 0  ;;  %s1438_s9 = smov [#allocation2]   ;;  %s1680_s0 = inlined_call_operand.vmem [shape: f32[8,1], index: 0, kind: input, shape index: {}]   ;;  %s1681_s1 = inlined_call_operand.hbm [shape: f32[136,128], index: 1, kind: input, shape index: {}]   ;;  %s1682_s2 = inlined_call_operand.vmem [shape: f32[8,128], index: 2, kind: output, shape index: {}]  }
   0x1   :  { %s15_s10 = sshll.u32 %s1438_s9, 4  ;;  %s1414_s13 = scalar_lea.hbm %s1681_s1, 2176  ;;  %s16_s10 = int_to_ptr.vmem [resolvable:$true] %s15_s10 }
   0x2   :  { %p1415_p0 = scmp.ne.s32.totalorder %s1681_s1, %s1414_s13  ;;  %p1418_p1 = scmp.lt.u32.totalorder %s1414_s13, %s1681_s1 }
   0x4   :  { %p1420_p2 = pnand %p1418_p1, %p1415_p0 }
   0x6   :  { %1423 = shalt.err (!%p1420_p2)
}
   0x7   :  { %s1424_s18 = scalar_lea.vmem %s16_s10, 2176  ;;  %p1429_p4 = scmp.lt.s32.totalorder %s16_s10, %s16_s10 }
   0x8   :  { %p1425_p3 = scmp.ne.s32.totalorder %s16_s10, %s1424_s18  ;;  %p1430_p5 = scmp.lt.s32.totalorder %s1424_s18, %s1424_s18 }
   0xa   :  { %p1431_p6 = por %p1430_p5, %p1429_p4 }
   0xc   :  { %p1432_p7 = pnand %p1431_p6, %p1425_p3 }
   0xe   :  { %1435 = shalt.err (!%p1432_p7)
}
   0xf   :  { %s1439_s19 = smov 128   ;;  %s1440_s20 = smov 8  }
  0x10   :  { %21 = dma.hbm_to_vmem [thread:$0]  %s1681_s1, 2176, %s16_s10, [#allocation3], %s1439_s19, %s1439_s19, %s1440_s20  }
  0x11   :  { %1436 = dma.done.wait [#allocation3], 2176  }
  0x12   :  { %1437 = vsyncadd [#allocation3], 4294965120  ;;  %v1441_v0 = vmov 0   ;;  %v1442_v1 = vmov 0.0|0.0   ;;  %v43_v2 = vld [vmem:[%s1680_s0] sm:$0xff]  ;;  %v26_v4 = vld [vmem:[#allocation2 + $0x8] sm:$0xff] }
  0x13   :  { %1379 = vset.pattern.permute.xlu0 %v1441_v0  ;;  %1179 = vmatprep.subr.bf16.mxu0 %v1442_v1  ;;  %v25_v3 = vld [vmem:[#allocation2] sm:$0xff]  ;;  %v27_v6 = vld [vmem:[#allocation2 + $0x10] sm:$0xff]  ;;  %v28_v7 = vld [vmem:[#allocation2 + $0x18] sm:$0xff]  ;;  %vm1443_vm0 = vmmov 0   ;;  %v1444_v14 = vmov 0.0   ;;  %v1445_v37 = vmov 32  }
  0x14   :  { %1203 = vmatprep.subr.bf16.mxu1 %v1442_v1  ;;  %48 = vperm.xlu0 %1379, %v43_v2   ;;  %v1478_v5 = vpack.c.bf16 %v26_v4, %v25_v3  ;;  %v1481_v8 = vpack.c.bf16 %v28_v7, %v27_v6  ;;  %v29_v9 = vld [vmem:[#allocation2 + $0x20] sm:$0xff]  ;;  %v30_v10 = vld [vmem:[#allocation2 + $0x28] sm:$0xff]  ;;  %v31_v12 = vld [vmem:[#allocation2 + $0x30] sm:$0xff] }
  0x15   :  { %v1487_v11 = vpack.c.bf16 %v30_v10, %v29_v9  ;;  %v32_v13 = vld [vmem:[#allocation2 + $0x38] sm:$0xff]  ;;  %931 = vmatprep.mubr.msk.f32.mxu0 %vm1443_vm0, %v1444_v14  ;;  %966 = vmatprep.mubr.msk.f32.mxu1 %vm1443_vm0, %v1444_v14  ;;  %v33_v16 = vld [vmem:[#allocation2 + $0x40] sm:$0xff]  ;;  %v34_v17 = vld [vmem:[#allocation2 + $0x48] sm:$0xff] }
  0x16   :  { %1181 = vmatpush3.bf16.msra.mxu0 %v1478_v5  ;;  %1205 = vmatpush3.bf16.msra.mxu1 %v1478_v5  ;;  %v1497_v15 = vpack.c.bf16 %v32_v13, %v31_v12  ;;  %v1503_v18 = vpack.c.bf16 %v34_v17, %v33_v16  ;;  %v35_v19 = vld [vmem:[#allocation2 + $0x50] sm:$0xff]  ;;  %v36_v20 = vld [vmem:[#allocation2 + $0x58] sm:$0xff]  ;;  %v37_v22 = vld [vmem:[#allocation2 + $0x60] sm:$0xff] }
  0x17   :  { %1182 = vmatprep.subr.bf16.mxu0 %v1442_v1  ;;  %1206 = vmatprep.subr.bf16.mxu1 %v1442_v1  ;;  %v1509_v21 = vpack.c.bf16 %v36_v20, %v35_v19  ;;  %v38_v23 = vld [vmem:[#allocation2 + $0x68] sm:$0xff]  ;;  %v39_v25 = vld [vmem:[#allocation2 + $0x70] sm:$0xff]  ;;  %v40_v26 = vld [vmem:[#allocation2 + $0x78] sm:$0xff] }
  0x18   :  { %v1515_v24 = vpack.c.bf16 %v38_v23, %v37_v22  ;;  %v1521_v27 = vpack.c.bf16 %v40_v26, %v39_v25  ;;  %v1530_v28 = vld [vmem:[#allocation2 + $0x81] ss:$0 sm:$0xff]  ;;  %v1532_v30 = vld [vmem:[#allocation2 + $0x80] ss:$0 sm:$0xff]  ;;  %1380 = vset.pattern.permute.xlu0 %v1445_v37  ;;  %1381 = vset.pattern.permute.xlu1 %v1445_v37 }
  0x1a   :  { %1184 = vmatpush3.bf16.msra.mxu0 %v1481_v8  ;;  %1208 = vmatpush3.bf16.msra.mxu1 %v1481_v8 }
  0x1b   :  { %1185 = vmatprep.subr.bf16.mxu0 %v1442_v1  ;;  %1209 = vmatprep.subr.bf16.mxu1 %v1442_v1 }
  0x1e   :  { %1187 = vmatpush3.bf16.msra.mxu0 %v1487_v11  ;;  %1211 = vmatpush3.bf16.msra.mxu1 %v1487_v11 }
  0x1f   :  { %1188 = vmatprep.subr.bf16.mxu0 %v1442_v1  ;;  %1212 = vmatprep.subr.bf16.mxu1 %v1442_v1 }
  0x22   :  { %1190 = vmatpush3.bf16.msra.mxu0 %v1497_v15  ;;  %1214 = vmatpush3.bf16.msra.mxu1 %v1497_v15 }
  0x23   :  { %1191 = vmatprep.subr.bf16.mxu0 %v1442_v1  ;;  %1215 = vmatprep.subr.bf16.mxu1 %v1442_v1 }
  0x26   :  { %1193 = vmatpush3.bf16.msra.mxu0 %v1503_v18  ;;  %1217 = vmatpush3.bf16.msra.mxu1 %v1503_v18 }
  0x27   :  { %1194 = vmatprep.subr.bf16.mxu0 %v1442_v1  ;;  %1218 = vmatprep.subr.bf16.mxu1 %v1442_v1 }
  0x2a   :  { %1196 = vmatpush3.bf16.msra.mxu0 %v1509_v21  ;;  %1220 = vmatpush3.bf16.msra.mxu1 %v1509_v21 }
  0x2b   :  { %1197 = vmatprep.subr.bf16.mxu0 %v1442_v1  ;;  %1221 = vmatprep.subr.bf16.mxu1 %v1442_v1 }
  0x2e   :  { %1199 = vmatpush3.bf16.msra.mxu0 %v1515_v24  ;;  %1223 = vmatpush3.bf16.msra.mxu1 %v1515_v24 }
  0x2f   :  { %1200 = vmatprep.subr.bf16.mxu0 %v1442_v1  ;;  %1224 = vmatprep.subr.bf16.mxu1 %v1442_v1 }
  0x32   :  { %1202 = vmatpush3.bf16.msra.mxu0 %v1521_v27  ;;  %1226 = vmatpush3.bf16.msra.mxu1 %v1521_v27 }
  0x33   :  { %1227 = vmatprep.subr.bf16.mxu0 %v1442_v1  ;;  %1251 = vmatprep.subr.bf16.mxu1 %v1442_v1 }
  0x93   :  { %v49_v29 = vpop.permute.xlu0 %48 }
  0x94   :  { %v55_v31 = vmul.f32 %v1530_v28, %v49_v29 }
  0x96   :  { %v60_v32 = vadd.f32 %v1532_v30, %v55_v31 }
  0x98   :  { %v61_v33 = vmul.f32 0.5, %v60_v32 }
  0x9a   :  { %1382 = vtanh.f32 %v61_v33 }
  0xa4   :  { %v1383_v34 = vpop.eup %1382 }
  0xa5   :  { %v63_v35 = vmul.f32 0.5, %v1383_v34 }
  0xa7   :  { %v64_v36 = vadd.f32 0.5, %v63_v35 }
  0xa9   :  { %932 = vmatmul.mubr.f32.vlgmr.msra.gmra.mrb[0].mxu0 %v64_v36 }
  0xaa   :  { %1229 = vmatpush3.bf16.msra.mxu0 %v1478_v5  ;;  %1001 = vmatprep.mubr.msk.f32.mxu0 %vm1443_vm0, %v1444_v14 }
  0xab   :  { %1230 = vmatprep.subr.bf16.mxu0 %v1442_v1 }
  0xae   :  { %1232 = vmatpush3.bf16.msra.mxu0 %v1481_v8 }
  0xaf   :  { %1233 = vmatprep.subr.bf16.mxu0 %v1442_v1 }
  0xb2   :  { %1235 = vmatpush3.bf16.msra.mxu0 %v1487_v11 }
  0xb3   :  { %1236 = vmatprep.subr.bf16.mxu0 %v1442_v1 }
  0xb6   :  { %1238 = vmatpush3.bf16.msra.mxu0 %v1497_v15 }
  0xb7   :  { %1239 = vmatprep.subr.bf16.mxu0 %v1442_v1 }
  0xba   :  { %1241 = vmatpush3.bf16.msra.mxu0 %v1503_v18 }
  0xbb   :  { %1242 = vmatprep.subr.bf16.mxu0 %v1442_v1 }
  0xbe   :  { %1244 = vmatpush3.bf16.msra.mxu0 %v1509_v21 }
  0xbf   :  { %1245 = vmatprep.subr.bf16.mxu0 %v1442_v1 }
  0xc2   :  { %1247 = vmatpush3.bf16.msra.mxu0 %v1515_v24 }
  0xc3   :  { %1248 = vmatprep.subr.bf16.mxu0 %v1442_v1 }
  0xc6   :  { %1250 = vmatpush3.bf16.msra.mxu0 %v1521_v27 }
  0xc7   :  { %1275 = vmatprep.subr.bf16.mxu0 %v1442_v1 }
 0x17c   :  { %v131_v38 = vpop.f32.mrb[0].mxu0 }
 0x17d   :  { %v132_v39 = vadd.f32 %v1532_v30, %v131_v38  ;;  %v933_v40 = vpop.f32.mrb[1].mxu0 }
 0x17f   :  { %v135_v41 = vmul.f32 0.5, %v132_v39 }
 0x181   :  { %1384 = vtanh.f32 %v135_v41 }
 0x18b   :  { %v1385_v42 = vpop.eup %1384 }
 0x18c   :  { %v137_v43 = vmul.f32 0.5, %v1385_v42 }
 0x18e   :  { %v138_v44 = vadd.f32 0.5, %v137_v43 }
 0x190   :  { %142 = vperm.xlu0 %1380, %v138_v44  }
 0x20f   :  { %v1555_v45 = vpop.permute.xlu0 %142 }
 0x210   :  { %v146_v46 = vmul.f32 %v1530_v28, %v1555_v45 }
 0x212   :  { %v147_v47 = vadd.f32 %v146_v46, %v132_v39 }
 0x214   :  { %v148_v48 = vmul.f32 0.5, %v147_v47 }
 0x216   :  { %1386 = vtanh.f32 %v148_v48 }
 0x220   :  { %v1387_v49 = vpop.eup %1386 }
 0x221   :  { %v150_v50 = vmul.f32 0.5, %v1387_v49 }
 0x223   :  { %v151_v51 = vadd.f32 0.5, %v150_v50 }
 0x225   :  { %967 = vmatmul.mubr.f32.vlgmr.msra.gmra.mrb[0].mxu1 %v151_v51 }
 0x226   :  { %1253 = vmatpush3.bf16.msra.mxu1 %v1478_v5  ;;  %1036 = vmatprep.mubr.msk.f32.mxu1 %vm1443_vm0, %v1444_v14 }
 0x227   :  { %1254 = vmatprep.subr.bf16.mxu1 %v1442_v1 }
 0x22a   :  { %1256 = vmatpush3.bf16.msra.mxu1 %v1481_v8 }
 0x22b   :  { %1257 = vmatprep.subr.bf16.mxu1 %v1442_v1 }
 0x22e   :  { %1259 = vmatpush3.bf16.msra.mxu1 %v1487_v11 }
 0x22f   :  { %1260 = vmatprep.subr.bf16.mxu1 %v1442_v1 }
 0x232   :  { %1262 = vmatpush3.bf16.msra.mxu1 %v1497_v15 }
 0x233   :  { %1263 = vmatprep.subr.bf16.mxu1 %v1442_v1 }
 0x236   :  { %1265 = vmatpush3.bf16.msra.mxu1 %v1503_v18 }
 0x237   :  { %1266 = vmatprep.subr.bf16.mxu1 %v1442_v1 }
 0x23a   :  { %1268 = vmatpush3.bf16.msra.mxu1 %v1509_v21 }
 0x23b   :  { %1269 = vmatprep.subr.bf16.mxu1 %v1442_v1 }
 0x23e   :  { %1271 = vmatpush3.bf16.msra.mxu1 %v1515_v24 }
 0x23f   :  { %1272 = vmatprep.subr.bf16.mxu1 %v1442_v1 }
 0x242   :  { %1274 = vmatpush3.bf16.msra.mxu1 %v1521_v27 }
 0x243   :  { %1299 = vmatprep.subr.bf16.mxu1 %v1442_v1 }
 0x2f8   :  { %v218_v52 = vpop.f32.mrb[0].mxu1 }
 0x2f9   :  { %v219_v53 = vadd.f32 %v1532_v30, %v218_v52  ;;  %v968_v54 = vpop.f32.mrb[1].mxu1 }
 0x2fb   :  { %v222_v55 = vmul.f32 0.5, %v219_v53 }
 0x2fd   :  { %1388 = vtanh.f32 %v222_v55 }
 0x307   :  { %v1389_v56 = vpop.eup %1388 }
 0x308   :  { %v224_v57 = vmul.f32 0.5, %v1389_v56 }
 0x30a   :  { %v225_v58 = vadd.f32 0.5, %v224_v57 }
 0x30c   :  { %229 = vperm.xlu1 %1381, %v225_v58  }
 0x38b   :  { %v1578_v59 = vpop.permute.xlu1 %229 }
 0x38c   :  { %v233_v60 = vmul.f32 %v1530_v28, %v1578_v59 }
 0x38e   :  { %v234_v61 = vadd.f32 %v233_v60, %v219_v53 }
 0x390   :  { %v235_v62 = vmul.f32 0.5, %v234_v61 }
 0x392   :  { %1390 = vtanh.f32 %v235_v62 }
 0x39c   :  { %v1391_v63 = vpop.eup %1390 }
 0x39d   :  { %v237_v0 = vmul.f32 0.5, %v1391_v63 }
 0x39f   :  { %v238_v2 = vadd.f32 0.5, %v237_v0 }
 0x3a1   :  { %1002 = vmatmul.mubr.f32.vlgmr.msra.gmra.mrb[2].mxu0 %v238_v2 }
 0x3a2   :  { %1277 = vmatpush3.bf16.msra.mxu0 %v1478_v5  ;;  %1071 = vmatprep.mubr.msk.f32.mxu0 %vm1443_vm0, %v1444_v14 }
 0x3a3   :  { %1278 = vmatprep.subr.bf16.mxu0 %v1442_v1 }
 0x3a6   :  { %1280 = vmatpush3.bf16.msra.mxu0 %v1481_v8 }
 0x3a7   :  { %1281 = vmatprep.subr.bf16.mxu0 %v1442_v1 }
 0x3aa   :  { %1283 = vmatpush3.bf16.msra.mxu0 %v1487_v11 }
 0x3ab   :  { %1284 = vmatprep.subr.bf16.mxu0 %v1442_v1 }
 0x3ae   :  { %1286 = vmatpush3.bf16.msra.mxu0 %v1497_v15 }
 0x3af   :  { %1287 = vmatprep.subr.bf16.mxu0 %v1442_v1 }
 0x3b2   :  { %1289 = vmatpush3.bf16.msra.mxu0 %v1503_v18 }
 0x3b3   :  { %1290 = vmatprep.subr.bf16.mxu0 %v1442_v1 }
 0x3b6   :  { %1292 = vmatpush3.bf16.msra.mxu0 %v1509_v21 }
 0x3b7   :  { %1293 = vmatprep.subr.bf16.mxu0 %v1442_v1 }
 0x3ba   :  { %1295 = vmatpush3.bf16.msra.mxu0 %v1515_v24 }
 0x3bb   :  { %1296 = vmatprep.subr.bf16.mxu0 %v1442_v1 }
 0x3be   :  { %1298 = vmatpush3.bf16.msra.mxu0 %v1521_v27 }
 0x3bf   :  { %1323 = vmatprep.subr.bf16.mxu0 %v1442_v1 }
 0x474   :  { %v305_v3 = vpop.f32.mrb[2].mxu0 }
 0x475   :  { %v306_v4 = vadd.f32 %v1532_v30, %v305_v3  ;;  %v1003_v6 = vpop.f32.mrb[3].mxu0 }
 0x477   :  { %v309_v7 = vmul.f32 0.5, %v306_v4 }
 0x479   :  { %1392 = vtanh.f32 %v309_v7 }
 0x483   :  { %v1393_v9 = vpop.eup %1392 }
 0x484   :  { %v311_v10 = vmul.f32 0.5, %v1393_v9 }
 0x486   :  { %v312_v12 = vadd.f32 0.5, %v311_v10 }
 0x488   :  { %316 = vperm.xlu1 %1381, %v312_v12  }
 0x507   :  { %v1601_v13 = vpop.permute.xlu1 %316 }
 0x508   :  { %v320_v16 = vmul.f32 %v1530_v28, %v1601_v13 }
 0x50a   :  { %v321_v17 = vadd.f32 %v320_v16, %v306_v4 }
 0x50c   :  { %v322_v19 = vmul.f32 0.5, %v321_v17 }
 0x50e   :  { %1394 = vtanh.f32 %v322_v19 }
 0x518   :  { %v1395_v20 = vpop.eup %1394 }
 0x519   :  { %v324_v22 = vmul.f32 0.5, %v1395_v20 }
 0x51b   :  { %v325_v23 = vadd.f32 0.5, %v324_v22 }
 0x51d   :  { %1037 = vmatmul.mubr.f32.vlgmr.msra.gmra.mrb[2].mxu1 %v325_v23 }
 0x51e   :  { %1301 = vmatpush3.bf16.msra.mxu1 %v1478_v5  ;;  %1106 = vmatprep.mubr.msk.f32.mxu1 %vm1443_vm0, %v1444_v14 }
 0x51f   :  { %1302 = vmatprep.subr.bf16.mxu1 %v1442_v1 }
 0x522   :  { %1304 = vmatpush3.bf16.msra.mxu1 %v1481_v8 }
 0x523   :  { %1305 = vmatprep.subr.bf16.mxu1 %v1442_v1 }
 0x526   :  { %1307 = vmatpush3.bf16.msra.mxu1 %v1487_v11 }
 0x527   :  { %1308 = vmatprep.subr.bf16.mxu1 %v1442_v1 }
 0x52a   :  { %1310 = vmatpush3.bf16.msra.mxu1 %v1497_v15 }
 0x52b   :  { %1311 = vmatprep.subr.bf16.mxu1 %v1442_v1 }
 0x52e   :  { %1313 = vmatpush3.bf16.msra.mxu1 %v1503_v18 }
 0x52f   :  { %1314 = vmatprep.subr.bf16.mxu1 %v1442_v1 }
 0x532   :  { %1316 = vmatpush3.bf16.msra.mxu1 %v1509_v21 }
 0x533   :  { %1317 = vmatprep.subr.bf16.mxu1 %v1442_v1 }
 0x536   :  { %1319 = vmatpush3.bf16.msra.mxu1 %v1515_v24 }
 0x537   :  { %1320 = vmatprep.subr.bf16.mxu1 %v1442_v1 }
 0x53a   :  { %1322 = vmatpush3.bf16.msra.mxu1 %v1521_v27 }
 0x53b   :  { %1347 = vmatprep.subr.bf16.mxu1 %v1442_v1 }
 0x5f0   :  { %v392_v25 = vpop.f32.mrb[2].mxu1 }
 0x5f1   :  { %v393_v26 = vadd.f32 %v1532_v30, %v392_v25  ;;  %v1038_v29 = vpop.f32.mrb[3].mxu1 }
 0x5f3   :  { %v396_v31 = vmul.f32 0.5, %v393_v26 }
 0x5f5   :  { %1396 = vtanh.f32 %v396_v31 }
 0x5ff   :  { %v1397_v32 = vpop.eup %1396 }
 0x600   :  { %v398_v33 = vmul.f32 0.5, %v1397_v32  ;;  %v44_v32 = vlaneseq }
 0x602   :  { %v399_v34 = vadd.f32 0.5, %v398_v33  ;;  %v45_v33 = vand.u32 127, %v44_v32 }
 0x604   :  { %403 = vperm.xlu1 %1381, %v399_v34   ;;  %vm139_vm1 = vcmp.eq.s32.totalorder %v45_v33, 0  ;;  %vm226_vm2 = vcmp.eq.s32.totalorder %v45_v33, 1  ;;  %vm313_vm3 = vcmp.eq.s32.totalorder %v45_v33, 2  ;;  %vm400_vm4 = vcmp.eq.s32.totalorder %v45_v33, 3 }
 0x605   :  { %vm487_vm5 = vcmp.eq.s32.totalorder %v45_v33, 4  ;;  %vm574_vm6 = vcmp.eq.s32.totalorder %v45_v33, 5  ;;  %vm661_vm7 = vcmp.eq.s32.totalorder %v45_v33, 6  ;;  %vm748_vm8 = vcmp.eq.s32.totalorder %v45_v33, 7 }
 0x683   :  { %v1624_v35 = vpop.permute.xlu1 %403 }
 0x684   :  { %v407_v36 = vmul.f32 %v1530_v28, %v1624_v35 }
 0x686   :  { %v408_v37 = vadd.f32 %v407_v36, %v393_v26 }
 0x688   :  { %v409_v38 = vmul.f32 0.5, %v408_v37 }
 0x68a   :  { %1398 = vtanh.f32 %v409_v38 }
 0x694   :  { %v1399_v39 = vpop.eup %1398 }
 0x695   :  { %v411_v40 = vmul.f32 0.5, %v1399_v39 }
 0x697   :  { %v412_v41 = vadd.f32 0.5, %v411_v40 }
 0x699   :  { %1072 = vmatmul.mubr.f32.vlgmr.msra.gmra.mrb[4].mxu0 %v412_v41 }
 0x69a   :  { %1325 = vmatpush3.bf16.msra.mxu0 %v1478_v5  ;;  %1141 = vmatprep.mubr.msk.f32.mxu0 %vm1443_vm0, %v1444_v14 }
 0x69b   :  { %1326 = vmatprep.subr.bf16.mxu0 %v1442_v1 }
 0x69e   :  { %1328 = vmatpush3.bf16.msra.mxu0 %v1481_v8 }
 0x69f   :  { %1329 = vmatprep.subr.bf16.mxu0 %v1442_v1 }
 0x6a2   :  { %1331 = vmatpush3.bf16.msra.mxu0 %v1487_v11 }
 0x6a3   :  { %1332 = vmatprep.subr.bf16.mxu0 %v1442_v1 }
 0x6a6   :  { %1334 = vmatpush3.bf16.msra.mxu0 %v1497_v15 }
 0x6a7   :  { %1335 = vmatprep.subr.bf16.mxu0 %v1442_v1 }
 0x6aa   :  { %1337 = vmatpush3.bf16.msra.mxu0 %v1503_v18 }
 0x6ab   :  { %1338 = vmatprep.subr.bf16.mxu0 %v1442_v1 }
 0x6ae   :  { %1340 = vmatpush3.bf16.msra.mxu0 %v1509_v21 }
 0x6af   :  { %1341 = vmatprep.subr.bf16.mxu0 %v1442_v1 }
 0x6b2   :  { %1343 = vmatpush3.bf16.msra.mxu0 %v1515_v24 }
 0x6b3   :  { %1344 = vmatprep.subr.bf16.mxu0 %v1442_v1 }
 0x6b6   :  { %1346 = vmatpush3.bf16.msra.mxu0 %v1521_v27 }
 0x76c   :  { %v479_v42 = vpop.f32.mrb[4].mxu0 }
 0x76d   :  { %v480_v43 = vadd.f32 %v1532_v30, %v479_v42  ;;  %v1073_v44 = vpop.f32.mrb[5].mxu0 }
 0x76f   :  { %v483_v46 = vmul.f32 0.5, %v480_v43 }
 0x771   :  { %1400 = vtanh.f32 %v483_v46 }
 0x77b   :  { %v1401_v47 = vpop.eup %1400 }
 0x77c   :  { %v485_v48 = vmul.f32 0.5, %v1401_v47 }
 0x77e   :  { %v486_v49 = vadd.f32 0.5, %v485_v48 }
 0x780   :  { %490 = vperm.xlu0 %1380, %v486_v49  }
 0x7ff   :  { %v1646_v50 = vpop.permute.xlu0 %490 }
 0x800   :  { %v494_v51 = vmul.f32 %v1530_v28, %v1646_v50 }
 0x802   :  { %v495_v52 = vadd.f32 %v494_v51, %v480_v43 }
 0x804   :  { %v496_v53 = vmul.f32 0.5, %v495_v52 }
 0x806   :  { %1402 = vtanh.f32 %v496_v53 }
 0x810   :  { %v1403_v54 = vpop.eup %1402 }
 0x811   :  { %v498_v55 = vmul.f32 0.5, %v1403_v54 }
 0x813   :  { %v499_v56 = vadd.f32 0.5, %v498_v55 }
 0x815   :  { %1107 = vmatmul.mubr.f32.vlgmr.msra.gmra.mrb[4].mxu1 %v499_v56 }
 0x816   :  { %1349 = vmatpush3.bf16.msra.mxu1 %v1478_v5  ;;  %1176 = vmatprep.mubr.msk.f32.mxu1 %vm1443_vm0, %v1444_v14 }
 0x817   :  { %1350 = vmatprep.subr.bf16.mxu1 %v1442_v1 }
 0x81a   :  { %1352 = vmatpush3.bf16.msra.mxu1 %v1481_v8 }
 0x81b   :  { %1353 = vmatprep.subr.bf16.mxu1 %v1442_v1 }
 0x81e   :  { %1355 = vmatpush3.bf16.msra.mxu1 %v1487_v11 }
 0x81f   :  { %1356 = vmatprep.subr.bf16.mxu1 %v1442_v1 }
 0x822   :  { %1358 = vmatpush3.bf16.msra.mxu1 %v1497_v15 }
 0x823   :  { %1359 = vmatprep.subr.bf16.mxu1 %v1442_v1 }
 0x826   :  { %1361 = vmatpush3.bf16.msra.mxu1 %v1503_v18 }
 0x827   :  { %1362 = vmatprep.subr.bf16.mxu1 %v1442_v1 }
 0x82a   :  { %1364 = vmatpush3.bf16.msra.mxu1 %v1509_v21 }
 0x82b   :  { %1365 = vmatprep.subr.bf16.mxu1 %v1442_v1 }
 0x82e   :  { %1367 = vmatpush3.bf16.msra.mxu1 %v1515_v24 }
 0x82f   :  { %1368 = vmatprep.subr.bf16.mxu1 %v1442_v1 }
 0x832   :  { %1370 = vmatpush3.bf16.msra.mxu1 %v1521_v27 }
 0x8e8   :  { %v566_v5 = vpop.f32.mrb[4].mxu1 }
 0x8e9   :  { %v567_v8 = vadd.f32 %v1532_v30, %v566_v5  ;;  %v1108_v11 = vpop.f32.mrb[5].mxu1 }
 0x8eb   :  { %v570_v14 = vmul.f32 0.5, %v567_v8 }
 0x8ed   :  { %1404 = vtanh.f32 %v570_v14 }
 0x8f7   :  { %v1405_v15 = vpop.eup %1404 }
 0x8f8   :  { %v572_v18 = vmul.f32 0.5, %v1405_v15 }
 0x8fa   :  { %v573_v57 = vadd.f32 0.5, %v572_v18 }
 0x8fc   :  { %577 = vperm.xlu1 %1381, %v573_v57  }
 0x97b   :  { %v578_v58 = vpop.permute.xlu1 %577 }
 0x97c   :  { %v581_v21 = vmul.f32 %v1530_v28, %v578_v58 }
 0x97e   :  { %v582_v60 = vadd.f32 %v581_v21, %v567_v8 }
 0x980   :  { %v583_v61 = vmul.f32 0.5, %v582_v60 }
 0x982   :  { %1406 = vtanh.f32 %v583_v61 }
 0x98c   :  { %v1407_v24 = vpop.eup %1406 }
 0x98d   :  { %v585_v1 = vmul.f32 0.5, %v1407_v24 }
 0x98f   :  { %v586_v62 = vadd.f32 0.5, %v585_v1 }
 0x991   :  { %1142 = vmatmul.mubr.f32.vlgmr.msra.gmra.mrb[6].mxu0 %v586_v62 }
 0xa64   :  { %v653_v27 = vpop.f32.mrb[6].mxu0 }
 0xa65   :  { %v654_v63 = vadd.f32 %v1532_v30, %v653_v27  ;;  %v1143_v0 = vpop.f32.mrb[7].mxu0 }
 0xa67   :  { %v657_v2 = vmul.f32 0.5, %v654_v63 }
 0xa69   :  { %1408 = vtanh.f32 %v657_v2 }
 0xa73   :  { %v1409_v3 = vpop.eup %1408 }
 0xa74   :  { %v659_v4 = vmul.f32 0.5, %v1409_v3 }
 0xa76   :  { %v660_v6 = vadd.f32 0.5, %v659_v4 }
 0xa78   :  { %664 = vperm.xlu0 %1380, %v660_v6  }
 0xaf7   :  { %v665_v7 = vpop.permute.xlu0 %664 }
 0xaf8   :  { %v668_v9 = vmul.f32 %v1530_v28, %v665_v7  ;;  %v145_v28 = vsel %vm139_vm1, %v1555_v45, 0.0 }
 0xaf9   :  { %v232_v34 = vsel %vm226_vm2, %v1578_v59, %v145_v28 }
 0xafa   :  { %v669_v10 = vadd.f32 %v668_v9, %v654_v63 }
 0xafc   :  { %v670_v12 = vmul.f32 0.5, %v669_v10 }
 0xafe   :  { %1410 = vtanh.f32 %v670_v12 }
 0xb08   :  { %v1411_v16 = vpop.eup %1410 }
 0xb09   :  { %v672_v17 = vmul.f32 0.5, %v1411_v16 }
 0xb0b   :  { %v673_v19 = vadd.f32 0.5, %v672_v17 }
 0xb0d   :  { %1177 = vmatmul.mubr.f32.vlgmr.msra.gmra.mrb[6].mxu1 %v673_v19 }
 0xbe0   :  { %v740_v20 = vpop.f32.mrb[6].mxu1 }
 0xbe1   :  { %v741_v22 = vadd.f32 %v1532_v30, %v740_v20  ;;  %v1178_v23 = vpop.f32.mrb[7].mxu1  ;;  %v319_v30 = vsel %vm313_vm3, %v1601_v13, %v232_v34 }
 0xbe2   :  { %v406_v36 = vsel %vm400_vm4, %v1624_v35, %v319_v30 }
 0xbe3   :  { %v744_v25 = vmul.f32 0.5, %v741_v22  ;;  %v493_v37 = vsel %vm487_vm5, %v1646_v50, %v406_v36 }
 0xbe4   :  { %v580_v38 = vsel %vm574_vm6, %v578_v58, %v493_v37 }
 0xbe5   :  { %1412 = vtanh.f32 %v744_v25  ;;  %v667_v39 = vsel %vm661_vm7, %v665_v7, %v580_v38 }
 0xbef   :  { %v1413_v26 = vpop.eup %1412 }
 0xbf0   :  { %v746_v29 = vmul.f32 0.5, %v1413_v26 }
 0xbf2   :  { %v747_v31 = vadd.f32 0.5, %v746_v29 }
 0xbf4   :  { %751 = vperm.xlu1 %1381, %v747_v31  }
 0xc73   :  { %v752_v40 = vpop.permute.xlu1 %751 }
 0xc74   :  { %v754_v41 = vsel %vm748_vm8, %v752_v40, %v667_v39 }
 0xc75   :  { %755 = vst [vmem:[%s1682_s2] sm:$0xff] %v754_v41 }
 0xc76   :  { %760 = vsyncpa [#allocation3], 1 }

</bundles_post_ra>
